<compile_context>
chip_gen: v6e
topology: v6e:2x2x1
jax: 0.10.0
libtpu: 0.0.40
codegen_flags: <defaults>
</compile_context>

<pallas_src>
import functools
import math

import jax
import jax.numpy as jnp
from jax.experimental import pallas as pl
from jax.experimental.pallas import tpu as pltpu

_NEG_LARGE = -1e30  # finite "-inf" for masking (avoids inf-inf NaN corner cases)


def _angular_penalty_kernel(x_ref, wt_ref, lab_ref, out_ref,
                            xs_ref, m_ref, d_ref, t_ref,
                            *, loss_type, s, m, eps, num_classes):
    j = pl.program_id(1)

    @pl.when(j == 0)
    def _init():
        x = x_ref[...]                                            # (TILE_N, D_pad)
        # F.normalize(x, p=2, dim=1) with the softmax scale folded in:
        #   xs = s * x / max(||x||, 1e-12)   (rsqrt on EUP, clamp on squared norm)
        inv = s * jax.lax.rsqrt(
            jnp.maximum(jnp.sum(x * x, axis=1, keepdims=True), 1e-24))
        xs_ref[...] = x * inv
        m_ref[...] = jnp.full_like(m_ref, _NEG_LARGE)
        d_ref[...] = jnp.zeros_like(d_ref)
        t_ref[...] = jnp.zeros_like(t_ref)

    # logits = s * (x_hat @ W.T) for this class tile; class axis is lane-dense.
    logits = jax.lax.dot_general(
        xs_ref[...], wt_ref[...], (((1,), (0,)), ((), ())),
        preferred_element_type=jnp.float32)                       # (TILE_N, TILE_C)
    tile_n, tile_c = logits.shape

    col = jax.lax.broadcasted_iota(jnp.int32, (tile_n, tile_c), 1) + j * tile_c
    lab = lab_ref[...]                                            # (TILE_N, 1) int32
    valid = col < num_classes
    logits_v = jnp.where(valid, logits, _NEG_LARGE)

    # Online max-subtracted sum of exp over all (valid) classes.
    m_old = m_ref[...]
    m_new = jnp.maximum(m_old, jnp.max(logits_v, axis=1, keepdims=True))
    alpha = jnp.exp(m_old - m_new)
    d_ref[...] = alpha * d_ref[...] + jnp.sum(
        jnp.exp(logits_v - m_new), axis=1, keepdims=True)
    m_ref[...] = m_new

    # Target logit s*wf[i, label[i]] (exactly one matching column over all tiles).
    t_ref[...] = t_ref[...] + jnp.sum(
        jnp.where(col == lab, logits, 0.0), axis=1, keepdims=True)

    @pl.when(j == pl.num_programs(1) - 1)
    def _finalize():
        st = t_ref[...]                                           # s * t
        t = st * (1.0 / s)
        if loss_type == "cosface":
            num = s * (t - m)
        elif loss_type == "arcface":
            tc = jnp.clip(t, -1.0 + eps, 1.0 - eps)
            # cos(acos(t) + m) == t*cos(m) - sqrt(1 - t^2)*sin(m)  (exact identity)
            num = s * (tc * math.cos(m) - jnp.sqrt(1.0 - tc * tc) * math.sin(m))
        else:
            # TODO(synk): sphereface needs cos(m*acos(t)) with non-integer m; arccos
            # has no guaranteed Mosaic lowering, so only arcface/cosface here.
            raise NotImplementedError(loss_type)

        mx = m_ref[...]
        # excl (scaled by exp(-mx)) = sum_c exp(s*wf_c - mx) - exp(s*t - mx)
        excl = jnp.maximum(d_ref[...] - jnp.exp(st - mx), 0.0)
        a = jnp.maximum(num, mx)
        # L = num - log(exp(num) + exp(mx) * excl), computed stably.
        out_ref[...] = num - (a + jnp.log(jnp.exp(num - a)
                                          + jnp.exp(mx - a) * excl))


def _round_up(v, mult):
    return ((v + mult - 1) // mult) * mult


def angular_penalty_sm_loss(x, weight, labels, *, loss_type="arcface",
                            s=None, m=None, eps=1e-7,
                            tile_n=None, tile_c=None):
    loss_type = loss_type.lower()
    assert loss_type in ("arcface", "sphereface", "cosface")
    if loss_type == "sphereface":
        # TODO(synk): sphereface needs arccos inside the kernel; not implemented.
        raise NotImplementedError("sphereface")
    if loss_type == "arcface":
        s = 64.0 if s is None else s
        m = 0.5 if m is None else m
    else:  # cosface
        s = 30.0 if s is None else s
        m = 0.4 if m is None else m

    n, d = x.shape
    c, d2 = weight.shape
    assert d == d2

    # --- tile sizing (MXU/lane aligned, fits default scoped VMEM on v5e/v6e/v7x) ---
    d_pad = _round_up(d, 128)
    if tile_n is None:
        tile_n = 256 if n >= 256 else _round_up(n, 8)
    if tile_c is None:
        # keep the double-buffered W tile <= ~12 MiB so it fits every generation's
        # default scoped-VMEM limit with headroom.
        budget_cols = max(128, (12 * 1024 * 1024) // (2 * 4 * d_pad))
        tile_c = min(_round_up(c, 128), (budget_cols // 128) * 128, 2048)
    n_pad = _round_up(n, tile_n)
    c_pad = _round_up(c, tile_c)

    x_p = jnp.zeros((n_pad, d_pad), jnp.float32).at[:n, :d].set(
        x.astype(jnp.float32))
    # Pre-transpose W once: (D, C) so the matmul RHS is lane-dense on classes.
    wt_p = jnp.zeros((d_pad, c_pad), jnp.float32).at[:d, :c].set(
        weight.astype(jnp.float32).T)
    lab_p = jnp.zeros((n_pad, 1), jnp.int32).at[:n, 0].set(
        labels.astype(jnp.int32))

    kernel = functools.partial(
        _angular_penalty_kernel, loss_type=loss_type, s=float(s), m=float(m),
        eps=float(eps), num_classes=c)

    grid = (n_pad // tile_n, c_pad // tile_c)
    per_row = pl.pallas_call(
        kernel,
        out_shape=jax.ShapeDtypeStruct((n_pad, 1), jnp.float32),
        grid_spec=pltpu.PrefetchScalarGridSpec(
            num_scalar_prefetch=0,
            grid=grid,
            in_specs=[
                pl.BlockSpec((tile_n, d_pad), lambda i, j: (i, 0)),
                pl.BlockSpec((d_pad, tile_c), lambda i, j: (0, j)),
                pl.BlockSpec((tile_n, 1), lambda i, j: (i, 0)),
            ],
            out_specs=pl.BlockSpec((tile_n, 1), lambda i, j: (i, 0)),
            scratch_shapes=[
                pltpu.VMEM((tile_n, d_pad), jnp.float32),   # s-scaled normalized x
                pltpu.VMEM((tile_n, 1), jnp.float32),       # running max
                pltpu.VMEM((tile_n, 1), jnp.float32),       # running sum(exp)
                pltpu.VMEM((tile_n, 1), jnp.float32),       # target logit s*t
            ]),
        compiler_params=pltpu.CompilerParams(
            dimension_semantics=("parallel", "arbitrary"),
            vmem_limit_bytes=32 * 1024 * 1024),
    )(x_p, wt_p, lab_p)

    return -jnp.mean(per_row[:n, 0])


def _reference(x, w, labels, *, loss_type="arcface", s=64.0, m=0.5, eps=1e-7):
    """Pure-JAX reference matching the PyTorch forward."""
    xn = x / jnp.maximum(jnp.linalg.norm(x, axis=1, keepdims=True), 1e-12)
    wf = xn @ w.T
    t = wf[jnp.arange(x.shape[0]), labels]
    if loss_type == "arcface":
        tc = jnp.clip(t, -1.0 + eps, 1.0 - eps)
        num = s * jnp.cos(jnp.arccos(tc) + m)
    else:  # cosface
        num = s * (t - m)
    excl = jnp.sum(jnp.exp(s * wf), axis=1) - jnp.exp(s * t)
    den = jnp.exp(num) + excl
    return -jnp.mean(num - jnp.log(den))


if __name__ == "__main__":
    N, IN_FEATURES, OUT_FEATURES = 8, 32, 16

    key = jax.random.PRNGKey(0)
    kx, kw, kl = jax.random.split(key, 3)

    x = jax.random.normal(kx, (N, IN_FEATURES), dtype=jnp.float32)
    # nn.Linear(in, out, bias=False) default init: U(-1/sqrt(in), 1/sqrt(in))
    bound = 1.0 / math.sqrt(IN_FEATURES)
    weight = jax.random.uniform(kw, (OUT_FEATURES, IN_FEATURES),
                                minval=-bound, maxval=bound, dtype=jnp.float32)
    labels = jax.random.randint(kl, (N,), 0, OUT_FEATURES, dtype=jnp.int32)

    loss_arc = angular_penalty_sm_loss(x, weight, labels, loss_type="arcface")
    loss_cos = angular_penalty_sm_loss(x, weight, labels, loss_type="cosface")
    jax.block_until_ready((loss_arc, loss_cos))

    ref_arc = _reference(x, weight, labels, loss_type="arcface", s=64.0, m=0.5)
    ref_cos = _reference(x, weight, labels, loss_type="cosface", s=30.0, m=0.4)

    assert jnp.isfinite(loss_arc), loss_arc
    assert jnp.isfinite(loss_cos), loss_cos
    assert jnp.allclose(loss_arc, ref_arc, rtol=1e-4, atol=1e-4), (loss_arc, ref_arc)
    assert jnp.allclose(loss_cos, ref_cos, rtol=1e-4, atol=1e-4), (loss_cos, ref_cos)
    print("KERNEL_OK")
</pallas_src>

<mosaic_0001>
module attributes {stable_mosaic.version = 11 : i64} {
  func.func @_angular_penalty_kernel(%arg0: i32, %arg1: i32, %arg2: memref<8x128xf32, #tpu.memory_space<vmem>>, %arg3: memref<128x128xf32, #tpu.memory_space<vmem>>, %arg4: memref<8x1xi32, #tpu.memory_space<vmem>>, %arg5: memref<8x1xf32, #tpu.memory_space<vmem>>, %arg6: memref<8x128xf32, #tpu.memory_space<vmem>>, %arg7: memref<8x1xf32, #tpu.memory_space<vmem>>, %arg8: memref<8x1xf32, #tpu.memory_space<vmem>>, %arg9: memref<8x1xf32, #tpu.memory_space<vmem>>) attributes {dimension_semantics = [#tpu.dimension_semantics<parallel>, #tpu.dimension_semantics<arbitrary>], iteration_bounds = array<i64: 1, 1>, scalar_prefetch = 0 : i64, scratch_operands = 4 : i64, tpu.core_type = #tpu.core_type<tc>, window_params = [{transform_indices = @transform_0, window_bounds = array<i64: 8, 128>}, {transform_indices = @transform_1, window_bounds = array<i64: 128, 128>}, {transform_indices = @transform_2, window_bounds = array<i64: 8, 1>}, {transform_indices = @transform_3, window_bounds = array<i64: 8, 1>}]} {
    %c0_i32 = arith.constant 0 : i32
    %0 = arith.cmpi eq, %arg1, %c0_i32 : i32
    %1 = arith.extui %0 : i1 to i32
    %c0_i32_0 = arith.constant 0 : i32
    %2 = arith.cmpi ne, %1, %c0_i32_0 : i32
    scf.if %2 {
      %c0_25 = arith.constant 0 : index
      %c0_26 = arith.constant 0 : index
      %43 = vector.load %arg2[%c0_25, %c0_26] : memref<8x128xf32, #tpu.memory_space<vmem>>, vector<8x128xf32>
      %44 = arith.mulf %43, %43 : vector<8x128xf32>
      %cst_27 = arith.constant dense<0.000000e+00> : vector<8xf32>
      %45 = vector.multi_reduction <add>, %44, %cst_27 [1] : vector<8x128xf32> to vector<8xf32>
      %46 = vector.shape_cast %45 : vector<8xf32> to vector<8x1xf32>
      %cst_28 = arith.constant 1.000000e-24 : f32
      %47 = vector.broadcast %cst_28 : f32 to vector<8x1xf32>
      %48 = arith.maximumf %46, %47 : vector<8x1xf32>
      %49 = math.rsqrt %48 : vector<8x1xf32>
      %cst_29 = arith.constant 6.400000e+01 : f32
      %50 = vector.broadcast %cst_29 : f32 to vector<8x1xf32>
      %51 = arith.mulf %50, %49 : vector<8x1xf32>
      %52 = vector.broadcast %51 : vector<8x1xf32> to vector<8x128xf32>
      %53 = arith.mulf %43, %52 : vector<8x128xf32>
      %c0_30 = arith.constant 0 : index
      %c0_31 = arith.constant 0 : index
      %54 = vector.load %arg6[%c0_30, %c0_31] : memref<8x128xf32, #tpu.memory_space<vmem>>, vector<8x128xf32>
      tpu.vector_store %arg6[%c0_30, %c0_31], %53 {strides = array<i32>} : memref<8x128xf32, #tpu.memory_space<vmem>>, vector<8x128xf32>,
      %cst_32 = arith.constant -1.000000e+30 : f32
      %55 = vector.broadcast %cst_32 : f32 to vector<8x1xf32>
      %c0_33 = arith.constant 0 : index
      %c0_34 = arith.constant 0 : index
      %56 = vector.load %arg7[%c0_33, %c0_34] : memref<8x1xf32, #tpu.memory_space<vmem>>, vector<8x1xf32>
      tpu.vector_store %arg7[%c0_33, %c0_34], %55 {strides = array<i32>} : memref<8x1xf32, #tpu.memory_space<vmem>>, vector<8x1xf32>,
      %cst_35 = arith.constant 0.000000e+00 : f32
      %57 = vector.broadcast %cst_35 : f32 to vector<8x1xf32>
      %c0_36 = arith.constant 0 : index
      %c0_37 = arith.constant 0 : index
      %58 = vector.load %arg8[%c0_36, %c0_37] : memref<8x1xf32, #tpu.memory_space<vmem>>, vector<8x1xf32>
      tpu.vector_store %arg8[%c0_36, %c0_37], %57 {strides = array<i32>} : memref<8x1xf32, #tpu.memory_space<vmem>>, vector<8x1xf32>,
      %cst_38 = arith.constant 0.000000e+00 : f32
      %59 = vector.broadcast %cst_38 : f32 to vector<8x1xf32>
      %c0_39 = arith.constant 0 : index
      %c0_40 = arith.constant 0 : index
      %60 = vector.load %arg9[%c0_39, %c0_40] : memref<8x1xf32, #tpu.memory_space<vmem>>, vector<8x1xf32>
      tpu.vector_store %arg9[%c0_39, %c0_40], %59 {strides = array<i32>} : memref<8x1xf32, #tpu.memory_space<vmem>>, vector<8x1xf32>,
    } else {
    }
    %c0 = arith.constant 0 : index
    %c0_1 = arith.constant 0 : index
    %3 = vector.load %arg6[%c0, %c0_1] : memref<8x128xf32, #tpu.memory_space<vmem>>, vector<8x128xf32>
    %c0_2 = arith.constant 0 : index
    %c0_3 = arith.constant 0 : index
    %4 = vector.load %arg3[%c0_2, %c0_3] : memref<128x128xf32, #tpu.memory_space<vmem>>, vector<128x128xf32>
    %cst = arith.constant dense<0.000000e+00> : vector<8x128xf32>
    %5 = tpu.matmul %3, %4, %cst {dimension_numbers = #tpu.dot_dimension_numbers<[1], [0], [0], [1], [0, 0, 1, 1], [], []>} : vector<8x128xf32>, vector<128x128xf32>, vector<8x128xf32> -> vector<8x128xf32>
    %6 = tpu.iota {dimensions = array<i32: 1>} : vector<8x128xi32>
    %c128_i32 = arith.constant 128 : i32
    %7 = arith.muli %arg1, %c128_i32 : i32
    %8 = vector.broadcast %7 : i32 to vector<8x128xi32>
    %9 = arith.addi %6, %8 : vector<8x128xi32>
    %c0_4 = arith.constant 0 : index
    %c0_5 = arith.constant 0 : index
    %10 = vector.load %arg4[%c0_4, %c0_5] : memref<8x1xi32, #tpu.memory_space<vmem>>, vector<8x1xi32>
    %c16_i32 = arith.constant 16 : i32
    %11 = vector.broadcast %c16_i32 : i32 to vector<8x128xi32>
    %12 = arith.cmpi slt, %9, %11 : vector<8x128xi32>
    %cst_6 = arith.constant -1.000000e+30 : f32
    %13 = vector.broadcast %cst_6 : f32 to vector<8x128xf32>
    %14 = arith.select %12, %5, %13 : vector<8x128xi1>, vector<8x128xf32>
    %c0_7 = arith.constant 0 : index
    %c0_8 = arith.constant 0 : index
    %15 = vector.load %arg7[%c0_7, %c0_8] : memref<8x1xf32, #tpu.memory_space<vmem>>, vector<8x1xf32>
    %cst_9 = arith.constant dense<0xFF800000> : vector<8xf32>
    %16 = vector.multi_reduction <maximumf>, %14, %cst_9 [1] : vector<8x128xf32> to vector<8xf32>
    %17 = vector.shape_cast %16 : vector<8xf32> to vector<8x1xf32>
    %18 = arith.maximumf %15, %17 : vector<8x1xf32>
    %19 = arith.subf %15, %18 : vector<8x1xf32>
    %20 = math.exp %19 : vector<8x1xf32>
    %c0_10 = arith.constant 0 : index
    %c0_11 = arith.constant 0 : index
    %21 = vector.load %arg8[%c0_10, %c0_11] : memref<8x1xf32, #tpu.memory_space<vmem>>, vector<8x1xf32>
    %22 = arith.mulf %20, %21 : vector<8x1xf32>
    %23 = vector.broadcast %18 : vector<8x1xf32> to vector<8x128xf32>
    %24 = arith.subf %14, %23 : vector<8x128xf32>
    %25 = math.exp %24 : vector<8x128xf32>
    %cst_12 = arith.constant dense<0.000000e+00> : vector<8xf32>
    %26 = vector.multi_reduction <add>, %25, %cst_12 [1] : vector<8x128xf32> to vector<8xf32>
    %27 = vector.shape_cast %26 : vector<8xf32> to vector<8x1xf32>
    %28 = arith.addf %22, %27 : vector<8x1xf32>
    %c0_13 = arith.constant 0 : index
    %c0_14 = arith.constant 0 : index
    %29 = vector.load %arg8[%c0_13, %c0_14] : memref<8x1xf32, #tpu.memory_space<vmem>>, vector<8x1xf32>
    tpu.vector_store %arg8[%c0_13, %c0_14], %28 {strides = array<i32>} : memref<8x1xf32, #tpu.memory_space<vmem>>, vector<8x1xf32>,
    %c0_15 = arith.constant 0 : index
    %c0_16 = arith.constant 0 : index
    %30 = vector.load %arg7[%c0_15, %c0_16] : memref<8x1xf32, #tpu.memory_space<vmem>>, vector<8x1xf32>
    tpu.vector_store %arg7[%c0_15, %c0_16], %18 {strides = array<i32>} : memref<8x1xf32, #tpu.memory_space<vmem>>, vector<8x1xf32>,
    %c0_17 = arith.constant 0 : index
    %c0_18 = arith.constant 0 : index
    %31 = vector.load %arg9[%c0_17, %c0_18] : memref<8x1xf32, #tpu.memory_space<vmem>>, vector<8x1xf32>
    %32 = vector.broadcast %10 : vector<8x1xi32> to vector<8x128xi32>
    %33 = arith.cmpi eq, %9, %32 : vector<8x128xi32>
    %cst_19 = arith.constant 0.000000e+00 : f32
    %34 = vector.broadcast %cst_19 : f32 to vector<8x128xf32>
    %35 = arith.select %33, %5, %34 : vector<8x128xi1>, vector<8x128xf32>
    %cst_20 = arith.constant dense<0.000000e+00> : vector<8xf32>
    %36 = vector.multi_reduction <add>, %35, %cst_20 [1] : vector<8x128xf32> to vector<8xf32>
    %37 = vector.shape_cast %36 : vector<8xf32> to vector<8x1xf32>
    %38 = arith.addf %31, %37 : vector<8x1xf32>
    %c0_21 = arith.constant 0 : index
    %c0_22 = arith.constant 0 : index
    %39 = vector.load %arg9[%c0_21, %c0_22] : memref<8x1xf32, #tpu.memory_space<vmem>>, vector<8x1xf32>
    tpu.vector_store %arg9[%c0_21, %c0_22], %38 {strides = array<i32>} : memref<8x1xf32, #tpu.memory_space<vmem>>, vector<8x1xf32>,
    %c0_i32_23 = arith.constant 0 : i32
    %40 = arith.cmpi eq, %arg1, %c0_i32_23 : i32
    %41 = arith.extui %40 : i1 to i32
    %c0_i32_24 = arith.constant 0 : i32
    %42 = arith.cmpi ne, %41, %c0_i32_24 : i32
    scf.if %42 {
      %c0_25 = arith.constant 0 : index
      %c0_26 = arith.constant 0 : index
      %43 = vector.load %arg9[%c0_25, %c0_26] : memref<8x1xf32, #tpu.memory_space<vmem>>, vector<8x1xf32>
      %cst_27 = arith.constant 1.562500e-02 : f32
      %44 = vector.broadcast %cst_27 : f32 to vector<8x1xf32>
      %45 = arith.mulf %43, %44 : vector<8x1xf32>
      %cst_28 = arith.constant -0.99999988 : f32
      %cst_29 = arith.constant 0.99999988 : f32
      %46 = vector.broadcast %cst_28 : f32 to vector<8x1xf32>
      %47 = arith.maximumf %46, %45 : vector<8x1xf32>
      %48 = vector.broadcast %cst_29 : f32 to vector<8x1xf32>
      %49 = arith.minimumf %48, %47 : vector<8x1xf32>
      %cst_30 = arith.constant 0.87758255 : f32
      %50 = vector.broadcast %cst_30 : f32 to vector<8x1xf32>
      %51 = arith.mulf %49, %50 : vector<8x1xf32>
      %52 = arith.mulf %49, %49 : vector<8x1xf32>
      %cst_31 = arith.constant 1.000000e+00 : f32
      %53 = vector.broadcast %cst_31 : f32 to vector<8x1xf32>
      %54 = arith.subf %53, %52 : vector<8x1xf32>
      %55 = math.sqrt %54 : vector<8x1xf32>
      %cst_32 = arith.constant 0.47942555 : f32
      %56 = vector.broadcast %cst_32 : f32 to vector<8x1xf32>
      %57 = arith.mulf %55, %56 : vector<8x1xf32>
      %58 = arith.subf %51, %57 : vector<8x1xf32>
      %cst_33 = arith.constant 6.400000e+01 : f32
      %59 = vector.broadcast %cst_33 : f32 to vector<8x1xf32>
      %60 = arith.mulf %59, %58 : vector<8x1xf32>
      %c0_34 = arith.constant 0 : index
      %c0_35 = arith.constant 0 : index
      %61 = vector.load %arg7[%c0_34, %c0_35] : memref<8x1xf32, #tpu.memory_space<vmem>>, vector<8x1xf32>
      %c0_36 = arith.constant 0 : index
      %c0_37 = arith.constant 0 : index
      %62 = vector.load %arg8[%c0_36, %c0_37] : memref<8x1xf32, #tpu.memory_space<vmem>>, vector<8x1xf32>
      %63 = arith.subf %43, %61 : vector<8x1xf32>
      %64 = math.exp %63 : vector<8x1xf32>
      %65 = arith.subf %62, %64 : vector<8x1xf32>
      %cst_38 = arith.constant 0.000000e+00 : f32
      %66 = vector.broadcast %cst_38 : f32 to vector<8x1xf32>
      %67 = arith.maximumf %65, %66 : vector<8x1xf32>
      %68 = arith.maximumf %60, %61 : vector<8x1xf32>
      %69 = arith.subf %60, %68 : vector<8x1xf32>
      %70 = math.exp %69 : vector<8x1xf32>
      %71 = arith.subf %61, %68 : vector<8x1xf32>
      %72 = math.exp %71 : vector<8x1xf32>
      %73 = arith.mulf %72, %67 : vector<8x1xf32>
      %74 = arith.addf %70, %73 : vector<8x1xf32>
      %75 = math.log %74 : vector<8x1xf32>
      %76 = arith.addf %68, %75 : vector<8x1xf32>
      %77 = arith.subf %60, %76 : vector<8x1xf32>
      %c0_39 = arith.constant 0 : index
      %c0_40 = arith.constant 0 : index
      %78 = vector.load %arg5[%c0_39, %c0_40] : memref<8x1xf32, #tpu.memory_space<vmem>>, vector<8x1xf32>
      tpu.vector_store %arg5[%c0_39, %c0_40], %77 {strides = array<i32>} : memref<8x1xf32, #tpu.memory_space<vmem>>, vector<8x1xf32>,
    } else {
    }
    return
  }
  func.func @transform_0(%arg0: i32, %arg1: i32) -> (i32, i32) {
    %c0_i32 = arith.constant 0 : i32
    %c0_i32_0 = arith.constant 0 : i32
    return %arg0, %c0_i32 : i32, i32
  }
  func.func @transform_1(%arg0: i32, %arg1: i32) -> (i32, i32) {
    %c0_i32 = arith.constant 0 : i32
    %c0_i32_0 = arith.constant 0 : i32
    return %c0_i32, %arg1 : i32, i32
  }
  func.func @transform_2(%arg0: i32, %arg1: i32) -> (i32, i32) {
    %c0_i32 = arith.constant 0 : i32
    %c0_i32_0 = arith.constant 0 : i32
    return %arg0, %c0_i32 : i32, i32
  }
  func.func @transform_3(%arg0: i32, %arg1: i32) -> (i32, i32) {
    %c0_i32 = arith.constant 0 : i32
    %c0_i32_0 = arith.constant 0 : i32
    return %arg0, %c0_i32 : i32, i32
  }
}

</mosaic_0001>

<bundles_post_ra>
// kernel: tpu_custom_call.1
= control target key start
LH: loop header
LB: loop body
LE: loop exit
PB: predicated region body
PF: predicated region fallthrough
CT: control target
= control target key end

     0   :  { %8 = vsyncpa [#allocation7], 0  ;;  %s319_s12 = smov [#allocation6]   ;;  %s384_s0 = inlined_call_operand.vmem [shape: f32[8,128], index: 0, kind: input, shape index: {}]   ;;  %s385_s1 = inlined_call_operand.hbm [shape: f32[128,128], index: 1, kind: input, shape index: {}]   ;;  %s386_s2 = inlined_call_operand.vmem [shape: s32[8,1], index: 2, kind: input, shape index: {}]   ;;  %s387_s3 = inlined_call_operand.vmem [shape: f32[8,1], index: 3, kind: output, shape index: {}]  }
   0x1   :  { %s16_s13 = sshll.u32 %s319_s12, 4  ;;  %s17_s13 = int_to_ptr.vmem [resolvable:$true] %s16_s13 }
   0x2   :  { %s305_s14 = scalar_lea.vmem %s17_s13, 2048  ;;  %p310_p1 = scmp.lt.s32.totalorder %s17_s13, %s17_s13 }
   0x3   :  { %p306_p0 = scmp.ne.s32.totalorder %s17_s13, %s305_s14  ;;  %p311_p2 = scmp.lt.s32.totalorder %s305_s14, %s305_s14 }
   0x5   :  { %p312_p3 = por %p311_p2, %p310_p1 }
   0x7   :  { %p313_p4 = pnand %p312_p3, %p306_p0 }
   0x9   :  { %316 = shalt.err (!%p313_p4)
}
   0xa   :  { %s320_s15 = smov 128   ;;  %s321_s16 = smov 8  }
   0xb   :  { %22 = dma.hbm_to_vmem [thread:$0]  %s385_s1, 2048, %s17_s13, [#allocation7], %s320_s15, %s320_s15, %s321_s16  }
   0xc   :  { %317 = dma.done.wait [#allocation7], 2048  }
   0xd   :  { %318 = vsyncadd [#allocation7], 4294965248  ;;  %v322_v0 = vmov 0.0   ;;  %v32_v1 = vld [vmem:[%s384_s0] sm:$0xff]  ;;  %v61_v2 = vld [vmem:[#allocation6 + $0x78] sm:$0xff]  ;;  %vm323_vm0 = vmmov 0   ;;  %v132_v27 = vlaneseq }
   0xe   :  { %237 = vmatprep.subr.mxu0 %v322_v0  ;;  %v60_v3 = vld [vmem:[#allocation6 + $0x70] sm:$0xff]  ;;  %v33_v4 = vmul.f32 %v32_v1, %v32_v1  ;;  %v59_v5 = vld [vmem:[#allocation6 + $0x68] sm:$0xff]  ;;  %v58_v6 = vld [vmem:[#allocation6 + $0x60] sm:$0xff]  ;;  %269 = vmatprep.mubr.msk.f32.mxu0 %vm323_vm0, %v322_v0  ;;  %v324_v20 = vmov 0   ;;  %vm41_vm1 = vcmask 7168  }
   0xf   :  { %238 = vmatpush3.msra.mxu0 %v61_v2  ;;  %v57_v7 = vld [vmem:[#allocation6 + $0x58] sm:$0xff]  ;;  %v56_v8 = vld [vmem:[#allocation6 + $0x50] sm:$0xff]  ;;  %v55_v9 = vld [vmem:[#allocation6 + $0x48] sm:$0xff]  ;;  %279 = vset.pattern.permute.xlu1 %v324_v20  ;;  %v325_v26 = vmov -1e+30   ;;  %43 = vst.msk [vmem:[#allocation4] sm:$0xff] %vm41_vm1, %v322_v0 }
  0x10   :  { %239 = vmatprep.subr.mxu0 %v322_v0  ;;  %34 = vadd.xlane.f32.xlu0 %v33_v4  ;;  %v54_v10 = vld [vmem:[#allocation6 + $0x40] sm:$0xff]  ;;  %v53_v11 = vld [vmem:[#allocation6 + $0x38] sm:$0xff]  ;;  %v52_v12 = vld [vmem:[#allocation6 + $0x30] sm:$0xff]  ;;  %42 = vst.msk [vmem:[#allocation3] sm:$0xff] %vm41_vm1, %v325_v26  ;;  %v133_v28 = vand.u32 127, %v132_v27 }
  0x11   :  { %240 = vmatpush3.msra.mxu0 %v60_v3  ;;  %v51_v13 = vld [vmem:[#allocation6 + $0x28] sm:$0xff]  ;;  %v50_v14 = vld [vmem:[#allocation6 + $0x20] sm:$0xff]  ;;  %v49_v15 = vld [vmem:[#allocation6 + $0x18] sm:$0xff]  ;;  %280 = vset.pattern.permute.xlu0 %v324_v20  ;;  %44 = vst.msk [vmem:[#allocation5] sm:$0xff] %vm41_vm1, %v322_v0 }
  0x12   :  { %241 = vmatprep.subr.mxu0 %v322_v0  ;;  %v48_v16 = vld [vmem:[#allocation6 + $0x10] sm:$0xff]  ;;  %v47_v17 = vld [vmem:[#allocation6 + $0x8] sm:$0xff]  ;;  %v46_v18 = vld [vmem:[#allocation6] sm:$0xff]  ;;  %vm138_vm2 = vcmp.lt.s32.totalorder %v133_v28, 16 }
  0x13   :  { %242 = vmatpush3.msra.mxu0 %v59_v5  ;;  %v137_v19 = vld [vmem:[%s386_s2] sm:$0xff] }
  0x14   :  { %243 = vmatprep.subr.mxu0 %v322_v0  ;;  %165 = vperm.xlu1 %279, %v137_v19  }
  0x15   :  { %244 = vmatpush3.msra.mxu0 %v58_v6 }
  0x16   :  { %245 = vmatprep.subr.mxu0 %v322_v0  ;;  %v147_v3 = vld [vmem:[#allocation4] sm:$0xff] }
  0x17   :  { %246 = vmatpush3.msra.mxu0 %v57_v7  ;;  %v140_v34 = vld [vmem:[#allocation3] sm:$0xff] }
  0x18   :  { %247 = vmatprep.subr.mxu0 %v322_v0  ;;  %v163_v37 = vld [vmem:[#allocation5] sm:$0xff] }
  0x19   :  { %248 = vmatpush3.msra.mxu0 %v56_v8 }
  0x1a   :  { %249 = vmatprep.subr.mxu0 %v322_v0 }
  0x1b   :  { %250 = vmatpush3.msra.mxu0 %v55_v9 }
  0x1c   :  { %251 = vmatprep.subr.mxu0 %v322_v0 }
  0x1d   :  { %252 = vmatpush3.msra.mxu0 %v54_v10 }
  0x1e   :  { %253 = vmatprep.subr.mxu0 %v322_v0 }
  0x1f   :  { %254 = vmatpush3.msra.mxu0 %v53_v11 }
  0x20   :  { %255 = vmatprep.subr.mxu0 %v322_v0 }
  0x21   :  { %256 = vmatpush3.msra.mxu0 %v52_v12 }
  0x22   :  { %257 = vmatprep.subr.mxu0 %v322_v0 }
  0x23   :  { %258 = vmatpush3.msra.mxu0 %v51_v13 }
  0x24   :  { %259 = vmatprep.subr.mxu0 %v322_v0 }
  0x25   :  { %260 = vmatpush3.msra.mxu0 %v50_v14 }
  0x26   :  { %261 = vmatprep.subr.mxu0 %v322_v0 }
  0x27   :  { %262 = vmatpush3.msra.mxu0 %v49_v15 }
  0x28   :  { %263 = vmatprep.subr.mxu0 %v322_v0 }
  0x29   :  { %264 = vmatpush3.msra.mxu0 %v48_v16 }
  0x2a   :  { %265 = vmatprep.subr.mxu0 %v322_v0 }
  0x2b   :  { %266 = vmatpush3.msra.mxu0 %v47_v17 }
  0x2c   :  { %267 = vmatprep.subr.mxu0 %v322_v0 }
  0x2d   :  { %268 = vmatpush3.msra.mxu0 %v46_v18 }
  0x8f   :  { %v166_v29 = vpop.permute.xlu1 %165 }
  0x90   :  { %vm167_vm3 = vcmp.eq.s32.totalorder %v133_v28, %v166_v29 }
  0x99   :  { %v35_v21 = vpop.xlane.xlu0 %34 }
  0x9a   :  { %v36_v22 = vmax.f32 %v35_v21, 1e-24 }
  0x9c   :  { %281 = vrsqrt.f32 %v36_v22 }
  0xa9   :  { %v282_v23 = vpop.eup %281 }
  0xaa   :  { %v38_v24 = vmul.f32 64.0, %v282_v23 }
  0xac   :  { %v39_v25 = vmul.f32 %v38_v24, %v32_v1 }
  0xae   :  { %270 = vmatmul.mubr.f32.vlgmr.msra.gmra.mxu0 %v39_v25 }
 0x16e   :  { %v128_v30 = vpop.f32.mrf.mxu0 }
 0x16f   :  { %v139_v31 = vsel %vm138_vm2, %v128_v30, -1e+30  ;;  %v168_v33 = vsel %vm167_vm3, %v128_v30, 0.0 }
 0x170   :  { %141 = vmax.xlane.f32.xlu0 %v139_v31  ;;  %v271_v32 = vpop.f32.mrf.mxu0 }
 0x174   :  { %169 = vadd.xlane.f32.xlu0 %v168_v33 }
 0x1f9   :  { %v142_v35 = vpop.xlane.xlu0 %141 }
 0x1fa   :  { %v143_v36 = vmax.f32 %v140_v34, %v142_v35 }
 0x1fc   :  { %v144_v38 = vsub.f32 %v140_v34, %v143_v36  ;;  %162 = vst.msk [vmem:[#allocation3] sm:$0xff] %vm41_vm1, %v143_v36  ;;  %151 = vperm.xlu1 %279, %v143_v36  }
 0x1fd   :  { %v170_v39 = vpop.xlane.xlu0 %169 }
 0x1fe   :  { %v171_v40 = vadd.f32 %v170_v39, %v163_v37  ;;  %v145_v56 = vmul.f32 1.442695, %v144_v38 }
 0x200   :  { %172 = vst.msk [vmem:[#allocation5] sm:$0xff] %vm41_vm1, %v171_v40 }
 0x203   :  { %v193_v60 = vld [vmem:[#allocation3] sm:$0xff] }
 0x207   :  { %v176_v45 = vld [vmem:[#allocation5] sm:$0xff] }
 0x208   :  { %v177_v46 = vmul.f32 0.015625, %v176_v45  ;;  %v195_v61 = vsub.f32 %v176_v45, %v193_v60 }
 0x20a   :  { %v219_v47 = vclamps-f32 %v177_v46, 0.9999999  ;;  %v196_v63 = vmul.f32 1.442695, %v195_v61 }
 0x20c   :  { %v181_v48 = vmul.f32 %v219_v47, %v219_v47  ;;  %v180_v57 = vmul.f32 0.87758255, %v219_v47 }
 0x20e   :  { %v182_v49 = vsub.f32 1.0, %v181_v48 }
 0x210   :  { %vm185_vm4 = vcmp.eq.f32.partialorder %v182_v49, inf  ;;  %v188_v53 = vand.u32 2147483648, %v182_v49  ;;  %vm187_vm5 = vcmp.eq.f32.partialorder %v182_v49, 0.0 }
 0x277   :  { %v152_v41 = vpop.permute.xlu1 %151 }
 0x278   :  { %v154_v42 = vsub.f32 %v139_v31, %v152_v41 }
 0x27a   :  { %v155_v43 = vmul.f32 1.442695, %v154_v42 }
 0x27c   :  { %283 = vpow2.f32 %v155_v43 }
 0x27d   :  { %285 = vrsqrt.f32 %v182_v49 }
 0x27e   :  { %287 = vpow2.f32 %v145_v56 }
 0x27f   :  { %289 = vpow2.f32 %v196_v63 }
 0x289   :  { %v284_v44 = vpop.eup %283 }
 0x28a   :  { %157 = vadd.xlane.f32.xlu1 %v284_v44  ;;  %v286_v50 = vpop.eup %285 }
 0x28b   :  { %v184_v51 = vmul.f32 %v286_v50, %v182_v49  ;;  %v288_v2 = vpop.eup %287 }
 0x28c   :  { %v148_v6 = vmul.f32 %v288_v2, %v147_v3  ;;  %v290_v9 = vpop.eup %289 }
 0x28d   :  { %v186_v52 = vsel %vm185_vm4, %v182_v49, %v184_v51 }
 0x28e   :  { %v189_v54 = vsel %vm187_vm5, %v188_v53, %v186_v52 }
 0x28f   :  { %v190_v55 = vmul.f32 0.47942555, %v189_v54 }
 0x291   :  { %v191_v58 = vsub.f32 %v180_v57, %v190_v55 }
 0x293   :  { %v192_v59 = vmul.f32 64.0, %v191_v58 }
 0x295   :  { %v200_v62 = vmax.f32 %v192_v59, %v193_v60 }
 0x297   :  { %v204_v0 = vsub.f32 %v193_v60, %v200_v62  ;;  %v201_v1 = vsub.f32 %v192_v59, %v200_v62 }
 0x299   :  { %v205_v4 = vmul.f32 1.442695, %v204_v0  ;;  %v202_v5 = vmul.f32 1.442695, %v201_v1 }
 0x29b   :  { %291 = vpow2.f32 %v205_v4 }
 0x29c   :  { %293 = vpow2.f32 %v202_v5 }
 0x2a8   :  { %v292_v13 = vpop.eup %291 }
 0x2a9   :  { %v294_v15 = vpop.eup %293 }
 0x313   :  { %v158_v7 = vpop.xlane.xlu1 %157 }
 0x314   :  { %v159_v8 = vadd.f32 %v158_v7, %v148_v6 }
 0x316   :  { %161 = vst.msk [vmem:[#allocation4] sm:$0xff] %vm41_vm1, %v159_v8 }
 0x31d   :  { %v194_v10 = vld [vmem:[#allocation4] sm:$0xff] }
 0x31e   :  { %v198_v11 = vsub.f32 %v194_v10, %v290_v9 }
 0x320   :  { %v199_v12 = vmax.f32 %v198_v11, 0.0 }
 0x322   :  { %v207_v14 = vmul.f32 %v292_v13, %v199_v12 }
 0x324   :  { %v208_v16 = vadd.f32 %v294_v15, %v207_v14 }
 0x326   :  { %295 = vlog2.f32 %v208_v16 }
 0x333   :  { %v296_v17 = vpop.eup %295 }
 0x334   :  { %v210_v18 = vmul.f32 0.6931472, %v296_v17 }
 0x336   :  { %v211_v19 = vadd.f32 %v210_v18, %v200_v62 }
 0x338   :  { %v212_v20 = vsub.f32 %v192_v59, %v211_v19 }
 0x33a   :  { %213 = vst.msk [vmem:[%s387_s3] sm:$0xff] %vm41_vm1, %v212_v20 }
 0x33b   :  { %218 = vsyncpa [#allocation7], 1 }

</bundles_post_ra>
